<compile_context>
chip_gen: v5e
topology: v5e:2x2
jax: 0.10.0
libtpu: 0.0.40
codegen_flags: <defaults>
</compile_context>

<pallas_src>
import jax
import jax.numpy as jnp
from jax.experimental import pallas as pl
from jax.experimental.pallas import tpu as pltpu

NEG_SLOPE = 0.2


# ------------------------------ Pallas kernel -------------------------------

def _downsample_conv_kernel(xm_ref, xh_ref, w_ref, o_ref, xbuf):
    """One (batch, row-tile) step of the 4x4/s2 conv + LeakyReLU.

    xm_ref: (1, TH,  Ws, 4C) bf16   current tile rows of the s2d input
    xh_ref: (1, 1,   Ws, 4C) bf16   one halo row below the tile
    w_ref : (16C, Cout)      bf16   flattened conv weight
    o_ref : (1, TH*Wout, Cout) f32  output slab for this tile
    xbuf  : VMEM (TH+1, Ws, 4C) bf16 staging buffer (tile + halo row)
    """
    th = xm_ref.shape[1]
    c4 = xm_ref.shape[3]
    w_out = o_ref.shape[1] // th

    # Stage tile rows + halo row contiguously in VMEM once (no per-tap HBM work).
    xbuf[pl.ds(0, th)] = xm_ref[0]
    xbuf[pl.ds(th, 1)] = xh_ref[0]

    # im2col over the four 2x2 stride-1 taps -> single K = 4*4C = 512 contraction.
    taps = [xbuf[pl.ds(dh, th), pl.ds(dw, w_out), :]
            for dh in (0, 1) for dw in (0, 1)]
    patch = jnp.concatenate(taps, axis=-1)            # (th, w_out, 4*c4) bf16
    patch = patch.reshape(th * w_out, 4 * c4)         # leading-dim merge only

    # One MXU matmul per tile: bf16 x bf16 -> f32 accumulate.
    acc = jnp.dot(patch, w_ref[...], preferred_element_type=jnp.float32)

    # Fused LeakyReLU(0.2) epilogue in f32 (VPU), contiguous slab store.
    o_ref[0] = jnp.where(acc >= 0, acc, NEG_SLOPE * acc).astype(o_ref.dtype)


def _pick_tile_h(h_out, ws, w_out, c4, c_out, budget=6 * 1024 * 1024):
    """Rows of output per grid step, sized so per-step VMEM stays small
    (safe under the 32 MiB scoped default, and under v7x's 64 MiB VMEM)."""
    per_row = (3 * ws * c4 * 2              # double-buffered bf16 input + scratch
               + 2 * w_out * 4 * c4 * 2     # bf16 im2col patch (+ flattened copy)
               + 2 * w_out * c_out * 4)     # double-buffered f32 output slab
    t = max(1, min(h_out, budget // max(1, per_row)))
    if t < h_out:
        t = max(8, (t // 8) * 8)            # keep output-slab sublane dim 8-aligned
    return t


def downsample_block(x_nchw, weight):
    """Conv2d(C, C, k=4, s=2, p=1, bias=False) + LeakyReLU(0.2).

    x_nchw: (N, C, H, W) f32 (PyTorch layout); weight: (KH, KW, Cin, Cout) f32.
    Returns (N, Cout, H//2, W//2) f32.
    """
    n, c, h, w = x_nchw.shape
    kh, kw, c_in, c_out = weight.shape
    assert (kh, kw) == (4, 4) and c_in == c
    h_out, w_out = h // 2, w // 2

    # --- One fused prep copy in HBM: NCHW->NHWC, pad=1, space-to-depth, bf16.
    # After this the stride-2 4x4 conv is a stride-1 2x2 conv over lane-dense
    # 4*C = 128 channels (full lane utilization for every kernel load).
    x = jnp.transpose(x_nchw, (0, 2, 3, 1)).astype(jnp.bfloat16)
    pad_h, pad_w = 1 + (h % 2), 1 + (w % 2)
    xp = jnp.pad(x, ((0, 0), (1, pad_h), (1, pad_w), (0, 0)))
    hs, ws = (h + 1 + pad_h) // 2, (w + 1 + pad_w) // 2
    xs = (xp.reshape(n, hs, 2, ws, 2, c)
            .transpose(0, 1, 3, 2, 4, 5)
            .reshape(n, hs, ws, 4 * c))                      # (N, Hs, Ws, 4C) bf16

    # weight[2dh+ph, 2dw+pw, ci, co] -> wf[(dh,dw,ph,pw,ci), co], bf16 (once).
    wf = (weight.reshape(2, 2, 2, 2, c, c_out)
                .transpose(0, 2, 1, 3, 4, 5)
                .reshape(16 * c, c_out)
                .astype(jnp.bfloat16))

    c4 = 4 * c
    tile_h = _pick_tile_h(h_out, ws, w_out, c4, c_out)
    n_tiles = pl.cdiv(h_out, tile_h)

    out_flat = pl.pallas_call(
        _downsample_conv_kernel,
        out_shape=jax.ShapeDtypeStruct((n, h_out * w_out, c_out), jnp.float32),
        grid=(n, n_tiles),
        in_specs=[
            # current tile rows of the s2d input
            pl.BlockSpec((1, tile_h, ws, c4), lambda b, t: (b, t, 0, 0)),
            # one halo row below the tile (clamped for a ragged last tile)
            pl.BlockSpec((1, 1, ws, c4),
                         lambda b, t: (b, jnp.minimum((t + 1) * tile_h, hs - 1),
                                       0, 0)),
            # flattened conv weight: constant index -> fetched once, stays resident
            pl.BlockSpec((16 * c, c_out), lambda b, t: (0, 0)),
        ],
        out_specs=pl.BlockSpec((1, tile_h * w_out, c_out), lambda b, t: (b, t, 0)),
        scratch_shapes=[pltpu.VMEM((tile_h + 1, ws, c4), jnp.bfloat16)],
        compiler_params=pltpu.CompilerParams(
            dimension_semantics=("parallel", "parallel")),
    )(xs, xs, wf)

    out = out_flat.reshape(n, h_out, w_out, c_out)           # free (metadata) reshape
    return jnp.transpose(out, (0, 3, 1, 2))                  # back to NCHW


# ----------------------------------- main ------------------------------------

if __name__ == "__main__":
    key = jax.random.PRNGKey(0)
    kx, kw_ = jax.random.split(key)
    N, C, H, W = 2, 32, 16, 16

    x = jax.random.normal(kx, (N, C, H, W), jnp.float32)
    weight = jax.random.normal(kw_, (4, 4, C, C), jnp.float32) * (2.0 / (16 * C)) ** 0.5

    fwd = jax.jit(downsample_block)
    y = fwd(x, weight)
    jax.block_until_ready(y)
    assert y.shape == (N, C, H // 2, W // 2), y.shape

    # Reference conv + LeakyReLU on bf16-rounded operands (the kernel feeds the
    # MXU bf16 with f32 accumulation, as requested by the perf review).
    xr = x.astype(jnp.bfloat16).astype(jnp.float32)
    wr = weight.astype(jnp.bfloat16).astype(jnp.float32)
    ref = jax.lax.conv_general_dilated(
        xr, jnp.transpose(wr, (3, 2, 0, 1)),
        window_strides=(2, 2), padding=((1, 1), (1, 1)))
    ref = jnp.where(ref >= 0, ref, NEG_SLOPE * ref)

    max_err = float(jnp.max(jnp.abs(y - ref)))
    assert max_err < 5e-3, f"max abs err {max_err}"
    print("KERNEL_OK")
</pallas_src>

<mosaic_0001>
module attributes {stable_mosaic.version = 11 : i64} {
  func.func @_downsample_conv_kernel(%arg0: i32, %arg1: i32, %arg2: memref<1x8x9x128xbf16, #tpu.memory_space<vmem>>, %arg3: memref<1x1x9x128xbf16, #tpu.memory_space<vmem>>, %arg4: memref<512x32xbf16, #tpu.memory_space<vmem>>, %arg5: memref<1x64x32xf32, #tpu.memory_space<vmem>>, %arg6: memref<9x9x128xbf16, #tpu.memory_space<vmem>>) attributes {dimension_semantics = [#tpu.dimension_semantics<parallel>, #tpu.dimension_semantics<parallel>], iteration_bounds = array<i64: 2, 1>, scalar_prefetch = 0 : i64, scratch_operands = 1 : i64, tpu.core_type = #tpu.core_type<tc>, window_params = [{transform_indices = @transform_0, window_bounds = array<i64: 1, 8, 9, 128>}, {transform_indices = @transform_1, window_bounds = array<i64: 1, 1, 9, 128>}, {pipeline_mode = #tpu.pipeline_mode<synchronous>, transform_indices = @transform_2, window_bounds = array<i64: 512, 32>}, {transform_indices = @transform_3, window_bounds = array<i64: 1, 64, 32>}]} {
    %c0 = arith.constant 0 : index
    %c0_0 = arith.constant 0 : index
    %c0_1 = arith.constant 0 : index
    %c0_2 = arith.constant 0 : index
    %0 = vector.load %arg2[%c0, %c0_0, %c0_1, %c0_2] : memref<1x8x9x128xbf16, #tpu.memory_space<vmem>>, vector<1x8x9x128xbf16>
    %1 = vector.shape_cast %0 : vector<1x8x9x128xbf16> to vector<8x9x128xbf16>
    %c0_3 = arith.constant 0 : index
    %c0_4 = arith.constant 0 : index
    %c0_5 = arith.constant 0 : index
    %2 = vector.load %arg6[%c0_3, %c0_4, %c0_5] : memref<9x9x128xbf16, #tpu.memory_space<vmem>>, vector<8x9x128xbf16>
    tpu.vector_store %arg6[%c0_3, %c0_4, %c0_5], %1 {strides = array<i32>} : memref<9x9x128xbf16, #tpu.memory_space<vmem>>, vector<8x9x128xbf16>,
    %c0_6 = arith.constant 0 : index
    %c0_7 = arith.constant 0 : index
    %c0_8 = arith.constant 0 : index
    %c0_9 = arith.constant 0 : index
    %3 = vector.load %arg3[%c0_6, %c0_7, %c0_8, %c0_9] : memref<1x1x9x128xbf16, #tpu.memory_space<vmem>>, vector<1x1x9x128xbf16>
    %4 = vector.shape_cast %3 : vector<1x1x9x128xbf16> to vector<1x9x128xbf16>
    %c8 = arith.constant 8 : index
    %c0_10 = arith.constant 0 : index
    %c0_11 = arith.constant 0 : index
    %5 = vector.load %arg6[%c8, %c0_10, %c0_11] : memref<9x9x128xbf16, #tpu.memory_space<vmem>>, vector<1x9x128xbf16>
    tpu.vector_store %arg6[%c8, %c0_10, %c0_11], %4 {strides = array<i32>} : memref<9x9x128xbf16, #tpu.memory_space<vmem>>, vector<1x9x128xbf16>,
    %c0_12 = arith.constant 0 : index
    %c0_13 = arith.constant 0 : index
    %c0_14 = arith.constant 0 : index
    %6 = vector.load %arg6[%c0_12, %c0_13, %c0_14] : memref<9x9x128xbf16, #tpu.memory_space<vmem>>, vector<8x8x128xbf16>
    %c0_15 = arith.constant 0 : index
    %c1 = arith.constant 1 : index
    %c0_16 = arith.constant 0 : index
    %7 = vector.load %arg6[%c0_15, %c1, %c0_16] : memref<9x9x128xbf16, #tpu.memory_space<vmem>>, vector<8x8x128xbf16>
    %c1_17 = arith.constant 1 : index
    %c0_18 = arith.constant 0 : index
    %c0_19 = arith.constant 0 : index
    %8 = vector.load %arg6[%c1_17, %c0_18, %c0_19] : memref<9x9x128xbf16, #tpu.memory_space<vmem>>, vector<8x8x128xbf16>
    %c1_20 = arith.constant 1 : index
    %c1_21 = arith.constant 1 : index
    %c0_22 = arith.constant 0 : index
    %9 = vector.load %arg6[%c1_20, %c1_21, %c0_22] : memref<9x9x128xbf16, #tpu.memory_space<vmem>>, vector<8x8x128xbf16>
    %10 = tpu.concatenate %6, %7, %8, %9 in 2 : vector<8x8x128xbf16>, vector<8x8x128xbf16>, vector<8x8x128xbf16>, vector<8x8x128xbf16> -> vector<8x8x512xbf16>
    %11 = vector.shape_cast %10 : vector<8x8x512xbf16> to vector<64x512xbf16>
    %c0_23 = arith.constant 0 : index
    %c0_24 = arith.constant 0 : index
    %12 = vector.load %arg4[%c0_23, %c0_24] : memref<512x32xbf16, #tpu.memory_space<vmem>>, vector<512x32xbf16>
    %cst = arith.constant dense<0.000000e+00> : vector<64x32xf32>
    %13 = tpu.matmul %11, %12, %cst {dimension_numbers = #tpu.dot_dimension_numbers<[1], [0], [0], [1], [0, 0, 1, 1], [], []>} : vector<64x512xbf16>, vector<512x32xbf16>, vector<64x32xf32> -> vector<64x32xf32>
    %cst_25 = arith.constant 0.000000e+00 : f32
    %14 = vector.broadcast %cst_25 : f32 to vector<64x32xf32>
    %15 = arith.cmpf oge, %13, %14 : vector<64x32xf32>
    %cst_26 = arith.constant 2.000000e-01 : f32
    %16 = vector.broadcast %cst_26 : f32 to vector<64x32xf32>
    %17 = arith.mulf %16, %13 : vector<64x32xf32>
    %18 = arith.select %15, %13, %17 : vector<64x32xi1>, vector<64x32xf32>
    %c0_27 = arith.constant 0 : index
    %c0_28 = arith.constant 0 : index
    %c0_29 = arith.constant 0 : index
    %19 = vector.load %arg5[%c0_27, %c0_28, %c0_29] : memref<1x64x32xf32, #tpu.memory_space<vmem>>, vector<1x64x32xf32>
    %20 = vector.shape_cast %19 : vector<1x64x32xf32> to vector<64x32xf32>
    %21 = vector.shape_cast %18 : vector<64x32xf32> to vector<1x64x32xf32>
    tpu.vector_store %arg5[%c0_27, %c0_28, %c0_29], %21 {strides = array<i32>} : memref<1x64x32xf32, #tpu.memory_space<vmem>>, vector<1x64x32xf32>,
    return
  }
  func.func @transform_0(%arg0: i32, %arg1: i32) -> (i32, i32, i32, i32) {
    %c0_i32 = arith.constant 0 : i32
    %c0_i32_0 = arith.constant 0 : i32
    %c0_i32_1 = arith.constant 0 : i32
    return %arg0, %arg1, %c0_i32, %c0_i32_0 : i32, i32, i32, i32
  }
  func.func @transform_1(%arg0: i32, %arg1: i32) -> (i32, i32, i32, i32) {
    %c1_i32 = arith.constant 1 : i32
    %0 = arith.addi %arg1, %c1_i32 : i32
    %c8_i32 = arith.constant 8 : i32
    %1 = arith.muli %0, %c8_i32 : i32
    %c8_i32_0 = arith.constant 8 : i32
    %2 = arith.minsi %1, %c8_i32_0 : i32
    %c0_i32 = arith.constant 0 : i32
    %c0_i32_1 = arith.constant 0 : i32
    %c0_i32_2 = arith.constant 0 : i32
    return %arg0, %2, %c0_i32, %c0_i32_1 : i32, i32, i32, i32
  }
  func.func @transform_2(%arg0: i32, %arg1: i32) -> (i32, i32) {
    %c0_i32 = arith.constant 0 : i32
    %c0_i32_0 = arith.constant 0 : i32
    %c0_i32_1 = arith.constant 0 : i32
    return %c0_i32, %c0_i32_0 : i32, i32
  }
  func.func @transform_3(%arg0: i32, %arg1: i32) -> (i32, i32, i32) {
    %c0_i32 = arith.constant 0 : i32
    %c0_i32_0 = arith.constant 0 : i32
    return %arg0, %arg1, %c0_i32 : i32, i32, i32
  }
}

</mosaic_0001>

<bundles_post_ra>
// kernel: downsample_block.1
= control target key start
LH: loop header
LB: loop body
LE: loop exit
PB: predicated region body
PF: predicated region fallthrough
CT: control target
= control target key end

     0   :  { %8 = vsyncpa [#allocation4], 0  ;;  %s1814_s0 = inlined_call_operand.vmem [shape: bf16[2,9,9,128], index: 0, kind: input, shape index: {}, may-alias: {0,1}]   ;;  %s1815_s1 = inlined_call_operand.vmem [shape: bf16[2,9,9,128], index: 1, kind: input, shape index: {}, may-alias: {0,1}]   ;;  %s1816_s2 = inlined_call_operand.vmem [shape: bf16[512,32], index: 2, kind: input, shape index: {}]   ;;  %s1817_s3 = inlined_call_operand.hbm [shape: f32[2,64,32], index: 3, kind: output, shape index: {}]  }
   0x1   :  { %10 = vsyncpa [#allocation4 + $0x1], 0  ;;  %s1485_s12 = smov 0   ;;  %s1487_s13 = smov 0  }
   0x2   :  { %s1489_s14 = smov 0   ;;  %s1491_s15 = smov 0  }
   0x3   :  { %s1493_s16 = smov 0   ;;  %s1495_s17 = smov 0  }
   0x4 LB: > { %s1147_s18 = sadd.s32 4294967295, %s1461_s17   ;;  %s1148_s19 = sadd.s32 4294967294, %s1461_s17   ;;  %s1461_s17 = sphi %s1495_s17, %s16_s17   ;;  %s1457_s16 = sphi %s1493_s16, %s1826_s16   ;;  %s1453_s15 = sphi %s1491_s15, %s1825_s15   ;;  %s1449_s14 = sphi %s1489_s14, %s1824_s14   ;;  %s1445_s13 = sphi %s1487_s13, %s1823_s13   ;;  %s1441_s12 = sphi %s1485_s12, %s1822_s12  }
   0x5   : > { %s28_s20 = sadd.s32 1, %s1457_s16  ;;  %s122_s21 = sadd.s32 1, %s1449_s14 }
   0x6   : > { %p30_p0 = scmp.ge.s32.totalorder %s28_s20, 2  ;;  %p132_p1 = scmp.ne.s32.totalorder %s1449_s14, %s1445_s13 }
   0x7   : > { %p133_p2 = scmp.eq.s32.totalorder %s1147_s18, 1  ;;  %p138_p3 = scmp.ne.s32.totalorder %s1445_s13, %s1441_s12 }
   0x8   : > { %s1828_s20 = smov (%p30_p0, %s28_s20), 0  ;;  %p139_p5 = scmp.eq.s32.totalorder %s1148_s19, 1 }
   0x9   : > { %p1525_p4 = por %p133_p2, %p132_p1  ;;  %s117_s23 = ssub.s32 %s1457_s16, %s1828_s20 }
   0xa   : > { %p1151_p6 = scmp.ge.s32.totalorder %s1461_s17, 1  ;;  %p120_p7 = scmp.eq.s32.totalorder %s117_s23, 0 }
   0xb   : > { %p1532_p8 = por %p139_p5, %p138_p3  ;;  %p204_p9 = scmp.lt.s32.totalorder %s1461_s17, 3 }
   0xc   : > { %s1538_s25 = scalar_select %p120_p7, %s1449_s14, %s122_s21  }
   0xd   : > { %p205_p10 = pnand %p1151_p6, %p204_p9 }
   0xe   : > { %p257_p11 = scmp.lt.s32.totalorder (!%p205_p10), %s1453_s15, 1  ;;  %s1322_s21 = sshll.u32 (!%p205_p10), %s1453_s15, 6 }
   0xf   : > { %208 = sbr.rel (%p205_p10) target bundleno = 253 (0xfd), region = 32  ;;  %s1040_s28 = scalar_lea.hbm (!%p205_p10), %s1817_s3, %s1322_s21 }
  0x10   : > { %s1043_s30 = sshll.u32 (!%p205_p10), %s1040_s28, 4  ;;  %s1044_s30 = int_to_ptr.hbm [resolvable:$true] %s1043_s30 }
  0x11   : > { %s1397_s4 = sshra.s32 (!%p205_p10), %s1044_s30, 4  ;;  %s1398_s4 = int_to_ptr.hbm [resolvable:$true] %s1397_s4 }
  0x12   : > { %s1399_s5 = scalar_lea.hbm (!%p205_p10), %s1398_s4, 64  ;;  %p1404_p1 = scmp.lt.s32.totalorder (!%p205_p10), %s1398_s4, %s1817_s3 }
  0x13   : > { %p1400_p12 = scmp.ne.s32.totalorder (!%p205_p10), %s1398_s4, %s1399_s5 }
  0x14   : > { %v1297_v0 = vld [vmem:[%s1816_s2 + $0x38] sm:$0xff]  ;;  %v1296_v4 = vld [vmem:[%s1816_s2 + $0x30] sm:$0xff]  ;;  %s1560_s11 = scalar_select %p257_p11, %s1453_s15, 1  ;;  %v1295_v8 = vld [vmem:[%s1816_s2 + $0x28] sm:$0xff]  ;;  %vm307_vm0 = vcmask 1040384   ;;  %vm1017_vm4 = vcmask 261120  }
  0x15   : > { %v1305_v1 = vld [vmem:[%s1816_s2 + $0x78] sm:$0xff]  ;;  %877 = vmatpush.bf16.msra.mxu0 %v1297_v0  ;;  %v1304_v5 = vld [vmem:[%s1816_s2 + $0x70] sm:$0xff]  ;;  %v1303_v9 = vld [vmem:[%s1816_s2 + $0x68] sm:$0xff]  ;;  %vm308_vm1 = vsmask.f32 256  ;;  %p1401_p13 = pnand %p1400_p12, %p1525_p4 }
  0x16   : > { %v1313_v2 = vld [vmem:[%s1816_s2 + $0xb8] sm:$0xff]  ;;  %906 = vmatpush.bf16.msra.mxu1 %v1305_v1  ;;  %v1312_v6 = vld [vmem:[%s1816_s2 + $0xb0] sm:$0xff]  ;;  %s1323_s26 = smul.u32 72, %s1560_s11  ;;  %v1311_v10 = vld [vmem:[%s1816_s2 + $0xa8] sm:$0xff] }
  0x17   : > { %v1321_v3 = vld [vmem:[%s1816_s2 + $0xf8] sm:$0xff]  ;;  %935 = vmatpush.bf16.msra.mxu2 %v1313_v2  ;;  %v1320_v7 = vld [vmem:[%s1816_s2 + $0xf0] sm:$0xff]  ;;  %v1319_v11 = vld [vmem:[%s1816_s2 + $0xe8] sm:$0xff]  ;;  %p1402_p0 = pneg %p1401_p13 }
  0x18   : > { %964 = vmatpush.bf16.msra.mxu3 %v1321_v3  ;;  %s1586_s10 = scalar_lea.vmem %s1814_s0, %s1323_s26  ;;  %v1294_v12 = vld [vmem:[%s1816_s2 + $0x20] sm:$0xff]  ;;  %v1293_v20 = vld [vmem:[%s1816_s2 + $0x18] sm:$0xff]  ;;  %vm1611_vm2 = vmand %vm307_vm0, %vm308_vm1  ;;  %s1289_s8 = sadd.s32 64, %s1323_s26 }
  0x19   : > { %878 = vmatpush.bf16.msra.mxu0 %v1296_v4  ;;  %v1302_v13 = vld [vmem:[%s1816_s2 + $0x60] sm:$0xff]  ;;  %v292_v18 = vld [vmem:[%s1586_s10 + $0x8] sm:$0xf]  ;;  %v293_v19 = vld [vmem:[%s1586_s10 + $0xc] sm:$0x1]  ;;  %s1706_s9 = scalar_lea.vmem %s1815_s1, %s1289_s8  ;;  %s1403_s8 = scalar_lea.hbm %s1817_s3, 128 }
  0x1a   : > { %907 = vmatpush.bf16.msra.mxu1 %v1304_v5  ;;  %v1310_v14 = vld [vmem:[%s1816_s2 + $0xa0] sm:$0xff]  ;;  %v1301_v21 = vld [vmem:[%s1816_s2 + $0x58] sm:$0xff]  ;;  %v314_v24 = vld [vmem:[#allocation2 + $0xc] sm:$0x1]  ;;  %313 = vst [vmem:[#allocation2 + $0x8] sm:$0xf] %v292_v18  ;;  %p1405_p2 = scmp.lt.s32.totalorder %s1403_s8, %s1399_s5 }
  0x1b   : > { %936 = vmatpush.bf16.msra.mxu2 %v1312_v6  ;;  %v1318_v15 = vld [vmem:[%s1816_s2 + $0xe0] sm:$0xff]  ;;  %v1309_v25 = vld [vmem:[%s1816_s2 + $0x98] sm:$0xff]  ;;  %v315_v28 = vsel %vm1611_vm2, %v293_v19, %v314_v24  ;;  %v294_v29 = vld [vmem:[%s1586_s10 + $0x10] sm:$0xf] }
  0x1c   : > { %965 = vmatpush.bf16.msra.mxu3 %v1320_v7  ;;  %v290_v16 = vld [vmem:[%s1586_s10] sm:$0xf]  ;;  %v291_v17 = vld [vmem:[%s1586_s10 + $0x4] sm:$0x1]  ;;  %v1317_v26 = vld [vmem:[%s1816_s2 + $0xd8] sm:$0xff]  ;;  %p1406_p3 = por %p1405_p2, %p1404_p1 }
  0x1d   : > { %879 = vmatpush.bf16.msra.mxu0 %v1295_v8  ;;  %306 = vst [vmem:[#allocation2] sm:$0xf] %v290_v16  ;;  %v310_v23 = vld [vmem:[#allocation2 + $0x4] sm:$0x1]  ;;  %v295_v30 = vld [vmem:[%s1586_s10 + $0x14] sm:$0x1] }
  0x1e   : > { %908 = vmatpush.bf16.msra.mxu1 %v1303_v9  ;;  %v311_v27 = vsel %vm1611_vm2, %v291_v17, %v310_v23  ;;  %v318_v31 = vld [vmem:[#allocation2 + $0x14] sm:$0x1]  ;;  %v296_v32 = vld [vmem:[%s1586_s10 + $0x18] sm:$0xf]  ;;  %316 = vst [vmem:[#allocation2 + $0xc] sm:$0x1] %v315_v28  ;;  %p1407_p5 = pnand %p1406_p3, %p1402_p0 }
  0x1f   : > { %937 = vmatpush.bf16.msra.mxu2 %v1311_v10  ;;  %312 = vst [vmem:[#allocation2 + $0x4] sm:$0x1] %v311_v27  ;;  %v319_v33 = vsel %vm1611_vm2, %v295_v30, %v318_v31  ;;  %v297_v34 = vld [vmem:[%s1586_s10 + $0x1c] sm:$0x1]  ;;  %v1292_v36 = vld [vmem:[%s1816_s2 + $0x10] sm:$0xff]  ;;  %v1291_v49 = vld [vmem:[%s1816_s2 + $0x8] sm:$0xff] }
  0x20   : > { %966 = vmatpush.bf16.msra.mxu3 %v1319_v11  ;;  %v322_v35 = vld [vmem:[#allocation2 + $0x1c] sm:$0x1]  ;;  %v1300_v37 = vld [vmem:[%s1816_s2 + $0x50] sm:$0xff]  ;;  %317 = vst [vmem:[#allocation2 + $0x10] sm:$0xf] %v294_v29  ;;  %v1299_v50 = vld [vmem:[%s1816_s2 + $0x48] sm:$0xff] }
  0x21   : > { %880 = vmatpush.bf16.msra.mxu0 %v1294_v12  ;;  %v323_v38 = vsel %vm1611_vm2, %v297_v34, %v322_v35  ;;  %v299_v39 = vld [vmem:[%s1586_s10 + $0x24] sm:$0x1]  ;;  %v1308_v40 = vld [vmem:[%s1816_s2 + $0x90] sm:$0xff]  ;;  %320 = vst [vmem:[#allocation2 + $0x14] sm:$0x1] %v319_v33  ;;  %v1307_v55 = vld [vmem:[%s1816_s2 + $0x88] sm:$0xff] }
  0x22   : > { %909 = vmatpush.bf16.msra.mxu1 %v1302_v13  ;;  %v1316_v41 = vld [vmem:[%s1816_s2 + $0xd0] sm:$0xff]  ;;  %v298_v42 = vld [vmem:[%s1586_s10 + $0x20] sm:$0xf]  ;;  %v326_v43 = vld [vmem:[#allocation2 + $0x24] sm:$0x1] }
  0x23   : > { %938 = vmatpush.bf16.msra.mxu2 %v1310_v14  ;;  %321 = vst [vmem:[#allocation2 + $0x18] sm:$0xf] %v296_v32  ;;  %v327_v44 = vsel %vm1611_vm2, %v299_v39, %v326_v43  ;;  %v301_v45 = vld [vmem:[%s1586_s10 + $0x2c] sm:$0x1]  ;;  %v300_v48 = vld [vmem:[%s1586_s10 + $0x28] sm:$0xf] }
  0x24   : > { %967 = vmatpush.bf16.msra.mxu3 %v1318_v15  ;;  %v330_v46 = vld [vmem:[#allocation2 + $0x2c] sm:$0x1]  ;;  %v1650_v47 = vld [vmem:[#allocation2] sm:$0xf]  ;;  %324 = vst [vmem:[#allocation2 + $0x1c] sm:$0x1] %v323_v38 }
  0x25   : > { %881 = vmatpush.bf16.msra.mxu0 %v1293_v20  ;;  %v349_v51 = vld [vmem:[#allocation2 + $0x8] sm:$0xf]  ;;  %v397_v52 = vunpack.c.l.b16 %v1650_v47  ;;  %325 = vst [vmem:[#allocation2 + $0x20] sm:$0xf] %v298_v42  ;;  %v331_v54 = vsel %vm1611_vm2, %v301_v45, %v330_v46  ;;  %v302_v60 = vld [vmem:[%s1586_s10 + $0x30] sm:$0xf] }
  0x26   : > { %910 = vmatpush.bf16.msra.mxu1 %v1301_v21  ;;  %v1660_v53 = vld [vmem:[#allocation2 + $0x8] sm:$0xf]  ;;  %v356_v57 = vld [vmem:[#allocation2 + $0x4] sm:$0x1]  ;;  %v399_v58 = vunpack.c.l.b16 %v349_v51  ;;  %328 = vst [vmem:[#allocation2 + $0x24] sm:$0x1] %v327_v44 }
  0x27   : > { %939 = vmatpush.bf16.msra.mxu2 %v1309_v25  ;;  %v1315_v56 = vld [vmem:[%s1816_s2 + $0xc8] sm:$0xff]  ;;  %v493_v59 = vunpack.c.l.b16 %v1660_v53  ;;  %v398_v62 = vunpack.c.l.b16 %v356_v57  ;;  %329 = vst [vmem:[#allocation2 + $0x28] sm:$0xf] %v300_v48  ;;  %v366_v1 = vld [vmem:[#allocation2 + $0x10] sm:$0xf]  ;;  %v1290_v14 = vld [vmem:[%s1816_s2] sm:$0xff] }
  0x28   : > { %968 = vmatpush.bf16.msra.mxu3 %v1317_v26  ;;  %v357_v61 = vld [vmem:[#allocation2 + $0xc] sm:$0x1]  ;;  %v1672_v3 = vld [vmem:[#allocation2 + $0x10] sm:$0xf]  ;;  %332 = vst [vmem:[#allocation2 + $0x2c] sm:$0x1] %v331_v54  ;;  %v495_v6 = vunpack.c.l.b16 %v366_v1  ;;  %v653_v32 = vpack.c.b16 %v399_v58, %v397_v52 }
  0x29   : > { %882 = vmatpush.bf16.msra.mxu0 %v1292_v36  ;;  %v373_v63 = vld [vmem:[#allocation2 + $0xc] sm:$0x1]  ;;  %v400_v0 = vunpack.c.l.b16 %v357_v61  ;;  %v413_v4 = vpack.c.b16 %v398_v62, %v397_v52  ;;  %v374_v5 = vld [vmem:[#allocation2 + $0x14] sm:$0x1]  ;;  %v401_v8 = vunpack.c.l.b16 %v1672_v3  ;;  %333 = vst [vmem:[#allocation2 + $0x30] sm:$0xf] %v302_v60 }
  0x2a   : > { %911 = vmatpush.bf16.msra.mxu1 %v1300_v37  ;;  %v494_v2 = vunpack.c.l.b16 %v373_v63  ;;  %v358_v7 = vld [vmem:[#allocation2 + $0x14] sm:$0x1]  ;;  %v496_v10 = vunpack.c.l.b16 %v374_v5  ;;  %v1675_v12 = vld [vmem:[#allocation2 + $0x18] sm:$0xf]  ;;  %v1298_v15 = vld [vmem:[%s1816_s2 + $0x40] sm:$0xff]  ;;  %v655_v37 = vpack.c.b16 %v495_v6, %v493_v59 }
  0x2b   : > { %940 = vmatpush.bf16.msra.mxu2 %v1308_v40  ;;  %v414_v9 = vpack.c.b16 %v400_v0, %v399_v58  ;;  %v402_v13 = vunpack.c.l.b16 %v358_v7  ;;  %v422_v16 = vshrl.u32 %v413_v4, 16  ;;  %v424_v17 = vshll.u32 %v413_v4, 16  ;;  %v359_v18 = vld [vmem:[#allocation2 + $0x1c] sm:$0x1]  ;;  %v1306_v20 = vld [vmem:[%s1816_s2 + $0x80] sm:$0xff] }
  0x2c   : > { %969 = vmatpush.bf16.msra.mxu3 %v1316_v41  ;;  %v509_v11 = vpack.c.b16 %v494_v2, %v493_v59  ;;  %v403_v19 = vunpack.c.l.b16 %v1675_v12  ;;  %v1314_v21 = vld [vmem:[%s1816_s2 + $0xc0] sm:$0xff]  ;;  %v510_v25 = vpack.c.b16 %v496_v10, %v495_v6  ;;  %v404_v29 = vunpack.c.l.b16 %v359_v18  ;;  %v1694_v31 = vld [vmem:[#allocation2 + $0x18] sm:$0xf]  ;;  %v375_v40 = vld [vmem:[#allocation2 + $0x1c] sm:$0x1] }
  0x2d   : > { %883 = vmatpush.bf16.msra.mxu0 %v1291_v49  ;;  %v429_v23 = vshrl.u32 %v414_v9, 16  ;;  %v431_v24 = vshll.u32 %v414_v9, 16  ;;  %v426_v27 = vrot.slane %v424_v17, 1  ;;  %v1692_v30 = vpack.c.b16 %v402_v13, %v401_v8  ;;  %v1700_v43 = vld [vmem:[#allocation2 + $0x20] sm:$0xf] }
  0x2e   : > { %912 = vmatpush.bf16.msra.mxu1 %v1299_v50  ;;  %v518_v26 = vshrl.u32 %v509_v11, 16  ;;  %v520_v28 = vshll.u32 %v509_v11, 16  ;;  %v525_v34 = vshrl.u32 %v510_v25, 16  ;;  %v527_v35 = vshll.u32 %v510_v25, 16  ;;  %v376_v44 = vld [vmem:[#allocation2 + $0x24] sm:$0x1] }
  0x2f   : > { %941 = vmatpush.bf16.msra.mxu2 %v1307_v55  ;;  %v433_v33 = vrot.slane %v431_v24, 1  ;;  %v427_v36 = vor.u32 %v426_v27, %v422_v16  ;;  %v416_v39 = vpack.c.b16 %v404_v29, %v403_v19  ;;  %v497_v45 = vunpack.c.l.b16 %v1694_v31  ;;  %v304_v49 = vld [vmem:[%s1586_s10 + $0x38] sm:$0xf]  ;;  %v341_v57 = vld [vmem:[%s1706_s9] sm:$0xf] }
  0x30   : > { %970 = vmatpush.bf16.msra.mxu3 %v1315_v56  ;;  %v522_v38 = vrot.slane %v520_v28, 1  ;;  %v529_v42 = vrot.slane %v527_v35, 1  ;;  %v438_v48 = vshll.u32 %v1692_v30, 16  ;;  %v498_v53 = vunpack.c.l.b16 %v375_v40  ;;  %337 = vst [vmem:[#allocation2 + $0x38] sm:$0xf] %v304_v49 }
  0x31   : > { %884 = vmatpush.bf16.msra.mxu0 %v1290_v14  ;;  %v434_v41 = vor.u32 %v433_v33, %v429_v23  ;;  %v573_v46 = vunpack.c.l.b16 %v427_v36  ;;  %v445_v52 = vshll.u32 %v416_v39, 16  ;;  %v499_v55 = vunpack.c.l.b16 %v1700_v43  ;;  %v303_v61 = vld [vmem:[%s1586_s10 + $0x34] sm:$0x1]  ;;  %344 = vst [vmem:[#allocation2 + $0x40] sm:$0xf] %v341_v57 }
  0x32   : > { %913 = vmatpush.bf16.msra.mxu1 %v1298_v15  ;;  %v523_v47 = vor.u32 %v522_v38, %v518_v26  ;;  %v530_v51 = vor.u32 %v529_v42, %v525_v34  ;;  %v500_v56 = vunpack.c.l.b16 %v376_v44  ;;  %v511_v60 = vpack.c.b16 %v498_v53, %v497_v45  ;;  %v1716_v1 = vld [vmem:[#allocation2 + $0x20] sm:$0xf]  ;;  %v334_v2 = vld [vmem:[#allocation2 + $0x34] sm:$0x1]  ;;  %v360_v9 = vld [vmem:[#allocation2 + $0x24] sm:$0x1] }
  0x33   : > { %942 = vmatpush.bf16.msra.mxu2 %v1306_v20  ;;  %v575_v50 = vunpack.c.l.b16 %v434_v41  ;;  %v436_v62 = vshrl.u32 %v1692_v30, 16  ;;  %v443_v63 = vshrl.u32 %v416_v39, 16  ;;  %v440_v5 = vrot.slane %v438_v48, 1  ;;  %v1718_v11 = vld [vmem:[#allocation2 + $0x28] sm:$0xf] }
  0x34   : > { %971 = vmatpush.bf16.msra.mxu3 %v1314_v21  ;;  %885 = vmatmul.bf16.vlgmr.msra.gmra.mxu0 %v653_v32  ;;  %v574_v54 = vunpack.c.l.b16 %v523_v47  ;;  %v576_v59 = vunpack.c.l.b16 %v530_v51  ;;  %v512_v0 = vpack.c.b16 %v500_v56, %v499_v55  ;;  %v447_v6 = vrot.slane %v445_v52, 1  ;;  %v361_v13 = vld [vmem:[#allocation2 + $0x2c] sm:$0x1]  ;;  %v1722_v18 = vld [vmem:[#allocation2 + $0x28] sm:$0xf] }
  0x35   : > { %v654_v58 = vpack.c.b16 %v575_v50, %v573_v46  ;;  %v534_v7 = vshll.u32 %v511_v60, 16  ;;  %v532_v14 = vshrl.u32 %v511_v60, 16  ;;  %v335_v17 = vsel %vm1611_vm2, %v303_v61, %v334_v2  ;;  %v377_v24 = vld [vmem:[#allocation2 + $0x2c] sm:$0x1]  ;;  %v305_v29 = vld [vmem:[%s1586_s10 + $0x3c] sm:$0x1] }
  0x36   : > { %943 = vmatmul.bf16.vlgmr.msra.gmra.mxu2 %v655_v37  ;;  %v656_v4 = vpack.c.b16 %v576_v59, %v574_v54  ;;  %v541_v10 = vshll.u32 %v512_v0, 16  ;;  %v539_v16 = vshrl.u32 %v512_v0, 16  ;;  %v405_v21 = vunpack.c.l.b16 %v1716_v1  ;;  %336 = vst [vmem:[#allocation2 + $0x34] sm:$0x1] %v335_v17  ;;  %v338_v30 = vld [vmem:[#allocation2 + $0x3c] sm:$0x1] }
  0x37   : > { %914 = vmatmul.bf16.vlgmr.msra.gmra.mxu1 %v654_v58  ;;  %v536_v15 = vrot.slane %v534_v7, 1  ;;  %v406_v23 = vunpack.c.l.b16 %v360_v9  ;;  %v441_v25 = vor.u32 %v440_v5, %v436_v62  ;;  %v448_v26 = vor.u32 %v447_v6, %v443_v63  ;;  %v1727_v34 = vld [vmem:[#allocation2 + $0x30] sm:$0xf]  ;;  %v342_v37 = vld [vmem:[%s1706_s9 + $0x4] sm:$0x1]  ;;  %s248_s10 = sand.u32 1, %s1445_s13  }
  0x38   : > { %972 = vmatmul.bf16.vlgmr.msra.gmra.mxu3 %v656_v4  ;;  %v543_v20 = vrot.slane %v541_v10, 1  ;;  %v407_v27 = vunpack.c.l.b16 %v1718_v11  ;;  %v408_v28 = vunpack.c.l.b16 %v361_v13  ;;  %v501_v35 = vunpack.c.l.b16 %v1722_v18  ;;  %v345_v38 = vld [vmem:[#allocation2 + $0x44] sm:$0x1]  ;;  %v354_v58 = vld [vmem:[#allocation2 + $0x30] sm:$0xf]  ;;  %s1152_s18 = sshll.u32 %s248_s10, 6 }
  0x39   : > { %v537_v32 = vor.u32 %v536_v15, %v532_v14  ;;  %v502_v36 = vunpack.c.l.b16 %v377_v24  ;;  %v417_v39 = vpack.c.b16 %v406_v23, %v405_v21  ;;  %v339_v40 = vsel %vm1611_vm2, %v305_v29, %v338_v30  ;;  %v355_v59 = vld [vmem:[#allocation2 + $0x38] sm:$0xf]  ;;  %v372_v5 = vld [vmem:[#allocation2 + $0x40] sm:$0xf]  ;;  %s1757_s19 = scalar_lea.vmem [#allocation3], %s1152_s18  ;;  %s1027_s15 = scalar_lea.sflag [#allocation4], %s248_s10 }
  0x3a   : > { %v544_v33 = vor.u32 %v543_v20, %v539_v16  ;;  %v657_v41 = vpack.c.b16 %v403_v19, %v401_v8  ;;  %v577_v42 = vunpack.c.l.b16 %v441_v25  ;;  %v579_v43 = vunpack.c.l.b16 %v448_v26  ;;  %340 = vst [vmem:[#allocation2 + $0x3c] sm:$0x1] %v339_v40  ;;  %v371_v62 = vld [vmem:[#allocation2 + $0x38] sm:$0xf]  ;;  %s1041_s29 = sshll.u32 %s1757_s19, 4  ;;  %s1042_s29 = int_to_ptr.vmem [resolvable:$true] %s1041_s29 }
  0x3b   : > { %v418_v44 = vpack.c.b16 %v408_v28, %v407_v27  ;;  %v659_v46 = vpack.c.b16 %v499_v55, %v497_v45  ;;  %v503_v47 = vunpack.c.l.b16 %v1727_v34  ;;  %v346_v48 = vsel %vm1611_vm2, %v342_v37, %v345_v38 }
  0x3c   : > { %v578_v49 = vunpack.c.l.b16 %v537_v32  ;;  %v580_v50 = vunpack.c.l.b16 %v544_v33  ;;  %v513_v8 = vpack.c.b16 %v502_v36, %v501_v35  ;;  %v452_v12 = vshll.u32 %v417_v39, 16  ;;  %347 = vst [vmem:[#allocation2 + $0x44] sm:$0x1] %v346_v48 }
  0x3d   : > { %v378_v3 = vld [vmem:[#allocation2 + $0x34] sm:$0x1]  ;;  %v658_v51 = vpack.c.b16 %v579_v43, %v577_v42  ;;  %v459_v52 = vshll.u32 %v418_v44, 16  ;;  %v450_v54 = vshrl.u32 %v417_v39, 16  ;;  %v457_v56 = vshrl.u32 %v418_v44, 16 }
  0x3e   : > { %v504_v19 = vunpack.c.l.b16 %v378_v3  ;;  %v660_v45 = vpack.c.b16 %v580_v50, %v578_v49  ;;  %v548_v53 = vshll.u32 %v513_v8, 16  ;;  %v454_v55 = vrot.slane %v452_v12, 1  ;;  %v362_v60 = vld [vmem:[#allocation2 + $0x34] sm:$0x1] }
  0x3f   : > { %v461_v57 = vrot.slane %v459_v52, 1  ;;  %v546_v63 = vshrl.u32 %v513_v8, 16  ;;  %v409_v7 = vunpack.c.l.b16 %v354_v58  ;;  %v410_v14 = vunpack.c.l.b16 %v362_v60 }
  0x40   : > { %v514_v31 = vpack.c.b16 %v504_v19, %v503_v47  ;;  %v550_v0 = vrot.slane %v548_v53, 1  ;;  %v455_v6 = vor.u32 %v454_v55, %v450_v54  ;;  %v411_v15 = vunpack.c.l.b16 %v355_v59 }
  0x41   : > { %v363_v61 = vld [vmem:[#allocation2 + $0x3c] sm:$0x1]  ;;  %v462_v13 = vor.u32 %v461_v57, %v457_v56  ;;  %v505_v17 = vunpack.c.l.b16 %v371_v62  ;;  %v507_v20 = vunpack.c.l.b16 %v372_v5  ;;  %v661_v28 = vpack.c.b16 %v407_v27, %v405_v21 }
  0x42   : > { %v555_v22 = vshll.u32 %v514_v31, 16  ;;  %v553_v2 = vshrl.u32 %v514_v31, 16  ;;  %v379_v9 = vld [vmem:[#allocation2 + $0x3c] sm:$0x1]  ;;  %v412_v16 = vunpack.c.l.b16 %v363_v61  ;;  %v551_v23 = vor.u32 %v550_v0, %v546_v63 }
  0x43   : > { %v380_v10 = vld [vmem:[#allocation2 + $0x44] sm:$0x1]  ;;  %v506_v25 = vunpack.c.l.b16 %v379_v9  ;;  %v581_v29 = vunpack.c.l.b16 %v455_v6  ;;  %v583_v30 = vunpack.c.l.b16 %v462_v13  ;;  %v419_v32 = vpack.c.b16 %v410_v14, %v409_v7 }
  0x44   : > { %890 = vmatmul.bf16.gmra.mxu0 %v657_v41  ;;  %v557_v4 = vrot.slane %v555_v22, 1  ;;  %v508_v26 = vunpack.c.l.b16 %v380_v10  ;;  %v420_v33 = vpack.c.b16 %v412_v16, %v411_v15  ;;  %v663_v34 = vpack.c.b16 %v503_v47, %v501_v35 }
  0x45   : > { %v582_v36 = vunpack.c.l.b16 %v551_v23  ;;  %v515_v38 = vpack.c.b16 %v506_v25, %v505_v17  ;;  %v662_v40 = vpack.c.b16 %v583_v30, %v581_v29  ;;  %v466_v41 = vshll.u32 %v419_v32, 16 }
  0x46   : > { %948 = vmatmul.bf16.gmra.mxu2 %v659_v46  ;;  %v558_v24 = vor.u32 %v557_v4, %v553_v2  ;;  %v516_v39 = vpack.c.b16 %v508_v26, %v507_v20  ;;  %v473_v42 = vshll.u32 %v420_v33, 16  ;;  %v464_v21 = vshrl.u32 %v419_v32, 16 }
  0x47   : > { %919 = vmatmul.bf16.gmra.mxu1 %v658_v51  ;;  %v562_v43 = vshll.u32 %v515_v38, 16  ;;  %v468_v27 = vrot.slane %v466_v41, 1  ;;  %v471_v44 = vshrl.u32 %v420_v33, 16  ;;  %v560_v18 = vshrl.u32 %v515_v38, 16 }
  0x48   : > { %977 = vmatmul.bf16.gmra.mxu3 %v660_v45  ;;  %v584_v37 = vunpack.c.l.b16 %v558_v24  ;;  %v569_v11 = vshll.u32 %v516_v39, 16  ;;  %v475_v46 = vrot.slane %v473_v42, 1  ;;  %v567_v47 = vshrl.u32 %v516_v39, 16 }
  0x49   : > { %v564_v35 = vrot.slane %v562_v43, 1  ;;  %v469_v49 = vor.u32 %v468_v27, %v464_v21  ;;  %v665_v12 = vpack.c.b16 %v411_v15, %v409_v7  ;;  %v667_v52 = vpack.c.b16 %v507_v20, %v505_v17 }
  0x4a   : > { %v664_v1 = vpack.c.b16 %v584_v37, %v582_v36  ;;  %v571_v48 = vrot.slane %v569_v11, 1  ;;  %v476_v50 = vor.u32 %v475_v46, %v471_v44 }
  0x4b   : > { %v565_v3 = vor.u32 %v564_v35, %v560_v18  ;;  %v585_v19 = vunpack.c.l.b16 %v469_v49 }
  0x4c   : > { %v572_v8 = vor.u32 %v571_v48, %v567_v47  ;;  %v587_v51 = vunpack.c.l.b16 %v476_v50 }
  0x4d   : > { %v586_v31 = vunpack.c.l.b16 %v565_v3 }
  0x4e   : > { %v588_v45 = vunpack.c.l.b16 %v572_v8  ;;  %v666_v53 = vpack.c.b16 %v587_v51, %v585_v19 }
  0x50   : > { %v668_v54 = vpack.c.b16 %v588_v45, %v586_v31 }
  0x54   : > { %895 = vmatmul.bf16.gmra.mxu0 %v661_v28 }
  0x56   : > { %953 = vmatmul.bf16.gmra.mxu2 %v663_v34 }
  0x57   : > { %924 = vmatmul.bf16.gmra.mxu1 %v662_v40 }
  0x58   : > { %982 = vmatmul.bf16.gmra.mxu3 %v664_v1 }
  0x64   : > { %900 = vmatmul.bf16.gmra.mxu0 %v665_v12 }
  0x66   : > { %958 = vmatmul.bf16.gmra.mxu2 %v667_v52 }
  0x67   : > { %929 = vmatmul.bf16.gmra.mxu1 %v666_v53 }
  0x68   : > { %987 = vmatmul.bf16.gmra.mxu3 %v668_v54 }
  0xb1   : > { %v886_v55 = vpop.f32.mrf.mxu0 }
  0xb4   : > { %v915_v22 = vpop.f32.mrf.mxu1 }
  0xb5   : > { %v916_v56 = vadd.f32 %v915_v22, %v886_v55 }
  0xb9   : > { %v944_v57 = vpop.f32.mrf.mxu2  ;;  %v888_v58 = vpop.f32.mrf.mxu0 }
  0xba   : > { %v945_v59 = vadd.f32 %v944_v57, %v916_v56 }
  0xbb   : > { %v973_v60 = vpop.f32.mrf.mxu3 }
  0xbc   : > { %v917_v61 = vpop.f32.mrf.mxu1  ;;  %v974_v62 = vadd.f32 %v973_v60, %v945_v59 }
  0xbd   : > { %v918_v0 = vadd.f32 %v917_v61, %v888_v58 }
  0xbe   : > { %vm993_vm3 = vcmp.ge.f32.partialorder %v974_v62, 0.0  ;;  %v1001_v63 = vmul.f32 0.2, %v974_v62 }
  0xc0   : > { %v1009_v5 = vsel %vm993_vm3, %v974_v62, %v1001_v63 }
  0xc1   : > { %v946_v2 = vpop.f32.mrf.mxu2  ;;  %v891_v4 = vpop.f32.mrf.mxu0  ;;  %1018 = vst.msk [vmem:[%s1757_s19] sm:$0xff] %vm1017_vm4, %v1009_v5 }
  0xc2   : > { %v947_v6 = vadd.f32 %v946_v2, %v918_v0 }
  0xc3   : > { %v975_v7 = vpop.f32.mrf.mxu3 }
  0xc4   : > { %v920_v9 = vpop.f32.mrf.mxu1  ;;  %v976_v10 = vadd.f32 %v975_v7, %v947_v6 }
  0xc5   : > { %v921_v13 = vadd.f32 %v920_v9, %v891_v4 }
  0xc6   : > { %vm994_vm5 = vcmp.ge.f32.partialorder %v976_v10, 0.0  ;;  %v1002_v14 = vmul.f32 0.2, %v976_v10 }
  0xc8   : > { %v1010_v17 = vsel %vm994_vm5, %v976_v10, %v1002_v14 }
  0xc9   : > { %v949_v15 = vpop.f32.mrf.mxu2  ;;  %v893_v16 = vpop.f32.mrf.mxu0  ;;  %1019 = vst.msk [vmem:[%s1757_s19 + $0x8] sm:$0xff] %vm1017_vm4, %v1010_v17 }
  0xca   : > { %v950_v20 = vadd.f32 %v949_v15, %v921_v13 }
  0xcb   : > { %v978_v23 = vpop.f32.mrf.mxu3 }
  0xcc   : > { %v922_v24 = vpop.f32.mrf.mxu1  ;;  %v979_v25 = vadd.f32 %v978_v23, %v950_v20 }
  0xcd   : > { %v923_v28 = vadd.f32 %v922_v24, %v893_v16 }
  0xce   : > { %vm995_vm6 = vcmp.ge.f32.partialorder %v979_v25, 0.0  ;;  %v1003_v26 = vmul.f32 0.2, %v979_v25 }
  0xd0   : > { %v1011_v32 = vsel %vm995_vm6, %v979_v25, %v1003_v26 }
  0xd1   : > { %v951_v29 = vpop.f32.mrf.mxu2  ;;  %v896_v30 = vpop.f32.mrf.mxu0  ;;  %1020 = vst.msk [vmem:[%s1757_s19 + $0x10] sm:$0xff] %vm1017_vm4, %v1011_v32 }
  0xd2   : > { %v952_v33 = vadd.f32 %v951_v29, %v923_v28 }
  0xd3   : > { %v980_v34 = vpop.f32.mrf.mxu3 }
  0xd4   : > { %v925_v36 = vpop.f32.mrf.mxu1  ;;  %v981_v37 = vadd.f32 %v980_v34, %v952_v33 }
  0xd5   : > { %v926_v38 = vadd.f32 %v925_v36, %v896_v30 }
  0xd6   : > { %vm996_vm7 = vcmp.ge.f32.partialorder %v981_v37, 0.0  ;;  %v1004_v39 = vmul.f32 0.2, %v981_v37 }
  0xd8   : > { %v1012_v42 = vsel %vm996_vm7, %v981_v37, %v1004_v39 }
  0xd9   : > { %v954_v40 = vpop.f32.mrf.mxu2  ;;  %v898_v41 = vpop.f32.mrf.mxu0  ;;  %1021 = vst.msk [vmem:[%s1757_s19 + $0x18] sm:$0xff] %vm1017_vm4, %v1012_v42 }
  0xda   : > { %v955_v1 = vadd.f32 %v954_v40, %v926_v38 }
  0xdb   : > { %v983_v43 = vpop.f32.mrf.mxu3 }
  0xdc   : > { %v927_v11 = vpop.f32.mrf.mxu1  ;;  %v984_v21 = vadd.f32 %v983_v43, %v955_v1 }
  0xdd   : > { %v928_v44 = vadd.f32 %v927_v11, %v898_v41 }
  0xde   : > { %vm997_vm8 = vcmp.ge.f32.partialorder %v984_v21, 0.0  ;;  %v1005_v27 = vmul.f32 0.2, %v984_v21 }
  0xe0   : > { %v1013_v18 = vsel %vm997_vm8, %v984_v21, %v1005_v27 }
  0xe1   : > { %v956_v46 = vpop.f32.mrf.mxu2  ;;  %v901_v47 = vpop.f32.mrf.mxu0  ;;  %1022 = vst.msk [vmem:[%s1757_s19 + $0x20] sm:$0xff] %vm1017_vm4, %v1013_v18 }
  0xe2   : > { %v957_v35 = vadd.f32 %v956_v46, %v928_v44 }
  0xe3   : > { %v985_v48 = vpop.f32.mrf.mxu3 }
  0xe4   : > { %v930_v49 = vpop.f32.mrf.mxu1  ;;  %v986_v50 = vadd.f32 %v985_v48, %v957_v35 }
  0xe5   : > { %v931_v3 = vadd.f32 %v930_v49, %v901_v47 }
  0xe6   : > { %vm998_vm9 = vcmp.ge.f32.partialorder %v986_v50, 0.0  ;;  %v1006_v8 = vmul.f32 0.2, %v986_v50 }
  0xe8   : > { %v1014_v19 = vsel %vm998_vm9, %v986_v50, %v1006_v8 }
  0xe9   : > { %v959_v12 = vpop.f32.mrf.mxu2  ;;  %1023 = vst.msk [vmem:[%s1757_s19 + $0x28] sm:$0xff] %vm1017_vm4, %v1014_v19  ;;  %v903_v52 = vpop.f32.mrf.mxu0 }
  0xea   : > { %v960_v51 = vadd.f32 %v959_v12, %v931_v3 }
  0xeb   : > { %v988_v31 = vpop.f32.mrf.mxu3 }
  0xec   : > { %v932_v45 = vpop.f32.mrf.mxu1  ;;  %v989_v53 = vadd.f32 %v988_v31, %v960_v51 }
  0xed   : > { %v933_v55 = vadd.f32 %v932_v45, %v903_v52 }
  0xee   : > { %vm999_vm10 = vcmp.ge.f32.partialorder %v989_v53, 0.0  ;;  %v1007_v54 = vmul.f32 0.2, %v989_v53 }
  0xf0   : > { %v1015_v56 = vsel %vm999_vm10, %v989_v53, %v1007_v54 }
  0xf1   : > { %v961_v22 = vpop.f32.mrf.mxu2  ;;  %1024 = vst.msk [vmem:[%s1757_s19 + $0x30] sm:$0xff] %vm1017_vm4, %v1015_v56 }
  0xf2   : > { %v962_v57 = vadd.f32 %v961_v22, %v933_v55 }
  0xf3   : > { %v990_v58 = vpop.f32.mrf.mxu3 }
  0xf4   : > { %v991_v59 = vadd.f32 %v990_v58, %v962_v57 }
  0xf6   : > { %vm1000_vm11 = vcmp.ge.f32.partialorder %v991_v59, 0.0  ;;  %v1008_v60 = vmul.f32 0.2, %v991_v59 }
  0xf8   : > { %v1016_v61 = vsel %vm1000_vm11, %v991_v59, %v1008_v60 }
  0xf9   : > { %1025 = vst.msk [vmem:[%s1757_s19 + $0x38] sm:$0xff] %vm1017_vm4, %v1016_v61 }
  0xfa   : > { %1410 = shalt.err (!%p1407_p5)
}
  0xfb   : > { %s1463_s9 = smov 128   ;;  %s1464_s10 = smov 8  }
  0xfc   : > { %1325 = dma.vmem_to_hbm [thread:$0]  (%p1525_p4), %s1042_s29, 1024, %s1044_s30, %s1027_s15, %s1463_s9, %s1463_s9, %s1464_s10  }
  0xfd PF: > { %p1332_p6 = scmp.ge.s32.totalorder %s1461_s17, 2  ;;  %s1058_s18 = sand.u32 1, %s1441_s12  }
  0xfe   : > { %s1059_s19 = scalar_lea.sflag [#allocation4], %s1058_s18 }
  0xff   : > { %p1328_p7 = pnand %p1332_p6, %p1532_p8 }
 0x101   : > { %p1329_p9 = pneg %p1328_p7 }
 0x103   : > { %1436 = dma.done.wait (%p1329_p9), %s1059_s19, 1024  }
 0x104   : > { %1438 = vsyncadd (%p1329_p9), %s1059_s19, 4294966272  ;;  %s16_s17 = sadd.s32 1, %s1461_s17   ;;  %s1822_s12 = smov %s1445_s13 }
 0x105   : > { %p13_p10 = scmp.ge.s32.totalorder %s16_s17, 4   ;;  %s1823_s13 = smov %s1449_s14 }
 0x106   : > { %s1824_s14 = smov %s1538_s25  ;;  %s1825_s15 = smov %s1457_s16 }
 0x107   : > { %s1826_s16 = smov %s1828_s20  ;;  %15 = sbr.rel (!%p13_p10) target bundleno = 4 (0x4), region = 72 }
 0x10c   :  { %1065 = vsyncpa [#allocation4], 1 }
 0x10d   :  { %1067 = vsyncpa [#allocation4 + $0x1], 1 }

</bundles_post_ra>
